<compile_context>
chip_gen: v6e
topology: v6e:2x2x1
jax: 0.10.0
libtpu: 0.0.40
codegen_flags: <defaults>
</compile_context>

<pallas_src>
import functools
import math

import jax
import jax.numpy as jnp
from jax import lax
from jax.experimental import pallas as pl
from jax.experimental.pallas import tpu as pltpu


def _layernorm(x, a, b, eps=1e-6):
    # matches torch: mean / unbiased std over last dim, divide by (std + eps)
    d = x.shape[-1]
    mean = jnp.mean(x, axis=-1, keepdims=True)
    diff = x - mean
    var = jnp.sum(diff * diff, axis=-1, keepdims=True) * (1.0 / (d - 1))
    std = jnp.sqrt(var)
    # exact divide (cheap, O(rows) work); approx reciprocal reserved for softmax
    return a * (diff / (std + eps)) + b


def _vmem_limit_bytes():
    # ~3/4 of physical VMEM (128 MiB v5e/v6e, 64 MiB v7x), capped at 100 MiB.
    try:
        cap = int(pltpu.get_tpu_info().vmem_capacity_bytes)
    except Exception:
        cap = 64 * 1024 * 1024
    return min(cap * 3 // 4, 100 * 1024 * 1024)


# --------------------------- kernel 1: LN1 + fused QKV projection ------------
def _qkv_proj_kernel(x_ref, wqkv_ref, bqkv_ref, ln1_a_ref, ln1_b_ref,
                     q_ref, k_ref, v_ref, *, scale):
    D = x_ref.shape[2]
    xn = _layernorm(x_ref[0], ln1_a_ref[0], ln1_b_ref[0])          # (TS, D) f32
    qkv = (jnp.dot(xn.astype(jnp.bfloat16), wqkv_ref[...],
                   preferred_element_type=jnp.float32) + bqkv_ref[0])  # (TS, 3D)
    q_ref[0] = (qkv[:, :D] * scale).astype(q_ref.dtype)   # fold 1/sqrt(dk) into Q
    k_ref[0] = qkv[:, D:2 * D].astype(k_ref.dtype)
    v_ref[0] = qkv[:, 2 * D:].astype(v_ref.dtype)


# --------------- kernel 2: attention + out-proj + residual + streamed FFN ----
def _attn_ffn_kernel(x_ref, mask_ref, q_ref, k_ref, v_ref,
                     wo_ref, bo_ref, w1_ref, b1_ref, w2_ref, b2_ref,
                     ln2_a_ref, ln2_b_ref,
                     out_ref,
                     x1_scr, xn2_scr, ff_scr,
                     *, num_heads):
    bf16 = jnp.bfloat16
    c = pl.program_id(2)                    # d_ff chunk index ("arbitrary" axis)
    q_tile = q_ref.shape[1]
    S = k_ref.shape[1]
    D = k_ref.shape[2]
    dk = D // num_heads

    @pl.when(c == 0)
    def _():
        # ---------------- attention sublayer (once per (b, q-tile)) ----------
        q = q_ref[0]                        # (TQ, D) bf16, already * 1/sqrt(dk)
        k = k_ref[0]                        # (S, D)  bf16
        v = v_ref[0]                        # (S, D)  bf16
        # additive mask bias, broadcast ONCE (hoisted out of the head loop)
        mask_bias = jnp.broadcast_to(((mask_ref[0, 0] - 1.0) * 1e9)[None, :],
                                     (q_tile, S))

        heads = []
        # static unroll over heads (small H); per-head live state is only
        # (TQ, dk) -- the big f32 accumulator of the old version is gone.
        # TODO(synk): for dk >= 128, switch to head-major packing in scratch.
        for h in range(num_heads):
            qh = q[:, h * dk:(h + 1) * dk]                  # (TQ, dk) bf16
            kh = k[:, h * dk:(h + 1) * dk]                  # (S, dk)  bf16
            vh = v[:, h * dk:(h + 1) * dk]                  # (S, dk)  bf16
            scores = lax.dot_general(                       # contract on dk
                qh, kh, (((1,), (1,)), ((), ())),
                preferred_element_type=jnp.float32)         # (TQ, S) f32
            scores = scores + mask_bias
            m = jnp.max(scores, axis=-1, keepdims=True)
            p = jnp.exp(scores - m)
            denom = jnp.sum(p, axis=-1, keepdims=True)
            # deferred normalization: unnormalized p -> P@V, scale (TQ,dk) after
            hout = jnp.dot(p.astype(bf16), vh, preferred_element_type=jnp.float32)
            heads.append(hout * pl.reciprocal(denom, approx=True))
        # pack all heads once and do ONE (TQ,D)@(D,D) output projection
        attn = jnp.concatenate(heads, axis=-1).astype(bf16)            # (TQ, D)
        attn_out = (jnp.dot(attn, wo_ref[...], preferred_element_type=jnp.float32)
                    + bo_ref[0])

        x1 = x_ref[0] + attn_out            # residual (dropout = identity)
        x1_scr[...] = x1
        xn2_scr[...] = _layernorm(x1, ln2_a_ref[0], ln2_b_ref[0]).astype(bf16)
        ff_scr[...] = jnp.zeros_like(ff_scr)

    # ---------------- FFN chunk: w1/w2 streamed over d_ff by the pipeline ----
    h1 = (jnp.dot(xn2_scr[...], w1_ref[...], preferred_element_type=jnp.float32)
          + b1_ref[0])
    h1 = jnp.maximum(h1, 0.0).astype(bf16)                  # ReLU
    ff_scr[...] += jnp.dot(h1, w2_ref[...], preferred_element_type=jnp.float32)

    @pl.when(c == pl.num_programs(2) - 1)
    def _():
        out_ref[0] = (x1_scr[...] + ff_scr[...] + b2_ref[0]).astype(out_ref.dtype)


def transformer_block(x, mask, params, *, num_heads, q_tile=None, dff_tile=None,
                      proj_tile=None):
    """x: (B, S, D) f32; mask: (B, 1, S) f32 of {0,1}."""
    B, S, D = x.shape
    d_ff = params["w1"].shape[1]
    dk = D // num_heads

    # bigger tiles amortize the ~0.35us/step overhead; VMEM-heavy parts (full
    # FFN weights, K/V recompute) are gone, so 512-wide defaults are safe.
    if q_tile is None:
        q_tile = S if S <= 512 else 512
    if dff_tile is None:
        dff_tile = d_ff if d_ff <= 1024 else 1024
    if proj_tile is None:
        proj_tile = q_tile
    assert S % q_tile == 0 and d_ff % dff_tile == 0 and S % proj_tile == 0
    nq = S // q_tile
    nffc = d_ff // dff_tile

    bf16 = jnp.bfloat16
    # Pre-concatenated QKV weight/bias (single fused array fed to kernel 1).
    wqkv = jnp.concatenate([params["wq"], params["wk"], params["wv"]], axis=1).astype(bf16)
    bqkv = jnp.concatenate([params["bq"], params["bk"], params["bv"]], axis=1)   # f32
    wo = params["wo"].astype(bf16)
    w1 = params["w1"].astype(bf16)
    w2 = params["w2"].astype(bf16)

    vmem_limit = _vmem_limit_bytes()

    # ------------------- kernel 1: LN1 + QKV over the full sequence ----------
    proj_kernel = functools.partial(_qkv_proj_kernel, scale=1.0 / math.sqrt(dk))
    qkv_out_shape = jax.ShapeDtypeStruct((B, S, D), bf16)
    qkv_out_spec = pl.BlockSpec((1, proj_tile, D), lambda b, s: (b, s, 0))
    q, k, v = pl.pallas_call(
        proj_kernel,
        out_shape=(qkv_out_shape, qkv_out_shape, qkv_out_shape),
        grid_spec=pltpu.PrefetchScalarGridSpec(
            num_scalar_prefetch=0,
            grid=(B, S // proj_tile),
            in_specs=[
                pl.BlockSpec((1, proj_tile, D), lambda b, s: (b, s, 0)),   # x
                pl.BlockSpec((D, 3 * D), lambda b, s: (0, 0)),             # wqkv
                pl.BlockSpec((1, 3 * D), lambda b, s: (0, 0)),             # bqkv
                pl.BlockSpec((1, D), lambda b, s: (0, 0)),                 # ln1_a
                pl.BlockSpec((1, D), lambda b, s: (0, 0)),                 # ln1_b
            ],
            out_specs=(qkv_out_spec, qkv_out_spec, qkv_out_spec),
        ),
        compiler_params=pltpu.CompilerParams(
            dimension_semantics=("parallel", "parallel"),
            vmem_limit_bytes=vmem_limit,
        ),
    )(x, wqkv, bqkv, params["ln1_a"], params["ln1_b"])

    # ------------- kernel 2: attention + residual + FFN (d_ff streamed) ------
    main_kernel = functools.partial(_attn_ffn_kernel, num_heads=num_heads)

    def const(shape):
        return pl.BlockSpec(shape, lambda b, qi, c: (0,) * len(shape))

    in_specs = [
        pl.BlockSpec((1, q_tile, D), lambda b, qi, c: (b, qi, 0)),   # x tile (residual)
        pl.BlockSpec((1, 1, S), lambda b, qi, c: (b, 0, 0)),         # mask
        pl.BlockSpec((1, q_tile, D), lambda b, qi, c: (b, qi, 0)),   # q tile (pre-scaled)
        pl.BlockSpec((1, S, D), lambda b, qi, c: (b, 0, 0)),         # k (full seq, bf16)
        pl.BlockSpec((1, S, D), lambda b, qi, c: (b, 0, 0)),         # v (full seq, bf16)
        const((D, D)), const((1, D)),                                # wo, bo
        pl.BlockSpec((D, dff_tile), lambda b, qi, c: (0, c)),        # w1 chunk (streamed)
        pl.BlockSpec((1, dff_tile), lambda b, qi, c: (0, c)),        # b1 chunk
        pl.BlockSpec((dff_tile, D), lambda b, qi, c: (c, 0)),        # w2 chunk (streamed)
        const((1, D)),                                               # b2
        const((1, D)), const((1, D)),                                # ln2 a, b
    ]

    return pl.pallas_call(
        main_kernel,
        out_shape=jax.ShapeDtypeStruct((B, S, D), x.dtype),
        grid_spec=pltpu.PrefetchScalarGridSpec(
            num_scalar_prefetch=0,
            grid=(B, nq, nffc),
            in_specs=in_specs,
            out_specs=pl.BlockSpec((1, q_tile, D), lambda b, qi, c: (b, qi, 0)),
            scratch_shapes=[
                pltpu.VMEM((q_tile, D), jnp.float32),   # x1: attn sublayer output
                pltpu.VMEM((q_tile, D), bf16),          # LN2(x1), bf16
                pltpu.VMEM((q_tile, D), jnp.float32),   # FFN accumulator
            ],
        ),
        compiler_params=pltpu.CompilerParams(
            dimension_semantics=("parallel", "parallel", "arbitrary"),
            vmem_limit_bytes=vmem_limit,
        ),
    )(x, mask, q, k, v, wo, params["bo"], w1, params["b1"], w2, params["b2"],
      params["ln2_a"], params["ln2_b"])


# ------------------------- pure-JAX f32 reference (for checking) -------------
def reference(x, mask, p, num_heads):
    B, S, D = x.shape
    dk = D // num_heads

    def ln(x, a, b, eps=1e-6):
        mean = jnp.mean(x, axis=-1, keepdims=True)
        var = jnp.sum((x - mean) ** 2, axis=-1, keepdims=True) / (D - 1)
        return a * (x - mean) / (jnp.sqrt(var) + eps) + b

    xn = ln(x, p["ln1_a"][0], p["ln1_b"][0])
    q = xn @ p["wq"] + p["bq"][0]
    k = xn @ p["wk"] + p["bk"][0]
    v = xn @ p["wv"] + p["bv"][0]
    qh = q.reshape(B, S, num_heads, dk).transpose(0, 2, 1, 3)
    kh = k.reshape(B, S, num_heads, dk).transpose(0, 2, 1, 3)
    vh = v.reshape(B, S, num_heads, dk).transpose(0, 2, 1, 3)
    scores = jnp.einsum("bhqd,bhkd->bhqk", qh, kh) / math.sqrt(dk)
    scores = jnp.where(mask[:, :, None, :] == 0.0, -1e9, scores)
    probs = jax.nn.softmax(scores, axis=-1)
    attn = jnp.einsum("bhqk,bhkd->bhqd", probs, vh).transpose(0, 2, 1, 3).reshape(B, S, D)
    x1 = x + (attn @ p["wo"] + p["bo"][0])
    xn2 = ln(x1, p["ln2_a"][0], p["ln2_b"][0])
    ff = jnp.maximum(xn2 @ p["w1"] + p["b1"][0], 0.0) @ p["w2"] + p["b2"][0]
    return x1 + ff


if __name__ == "__main__":
    # Small but lane-dense shapes: D and d_ff multiples of 128.
    B, S, D, H, D_FF = 2, 128, 128, 4, 256

    key = jax.random.PRNGKey(0)
    ks = jax.random.split(key, 16)

    def w(k, shape, scale=0.05):
        return (scale * jax.random.normal(k, shape)).astype(jnp.float32)

    params = {
        "wq": w(ks[0], (D, D)), "bq": w(ks[1], (1, D)),
        "wk": w(ks[2], (D, D)), "bk": w(ks[3], (1, D)),
        "wv": w(ks[4], (D, D)), "bv": w(ks[5], (1, D)),
        "wo": w(ks[6], (D, D)), "bo": w(ks[7], (1, D)),
        "w1": w(ks[8], (D, D_FF)), "b1": w(ks[9], (1, D_FF)),
        "w2": w(ks[10], (D_FF, D)), "b2": w(ks[11], (1, D)),
        # LayerNorm params as initialized in the module: ones / zeros
        "ln1_a": jnp.ones((1, D), jnp.float32), "ln1_b": jnp.zeros((1, D), jnp.float32),
        "ln2_a": jnp.ones((1, D), jnp.float32), "ln2_b": jnp.zeros((1, D), jnp.float32),
    }

    x = jax.random.normal(ks[12], (B, S, D), dtype=jnp.float32)
    # key-padding style mask: 1 = attend, 0 = masked (last 32 keys of batch 1 masked)
    mask = jnp.ones((B, 1, S), dtype=jnp.float32).at[1, 0, S - 32:].set(0.0)

    # small tiles so the test exercises both the query and d_ff grid axes
    out = transformer_block(x, mask, params, num_heads=H, q_tile=64, dff_tile=128)
    out = jax.block_until_ready(out)

    ref = reference(x, mask, params, H)
    assert out.shape == (B, S, D)
    max_err = float(jnp.max(jnp.abs(out - ref)))
    # bf16 MXU operands (f32 accumulation) + approx softmax reciprocal => relaxed
    # tolerance vs the pure-f32 reference.
    assert jnp.allclose(out, ref, atol=3e-2, rtol=3e-2), f"mismatch vs reference (max abs err {max_err})"

    print("KERNEL_OK")
</pallas_src>

<mosaic_0001>
module attributes {stable_mosaic.version = 11 : i64} {
  func.func @_qkv_proj_kernel(%arg0: i32, %arg1: i32, %arg2: memref<1x64x128xf32, #tpu.memory_space<vmem>>, %arg3: memref<128x384xbf16, #tpu.memory_space<vmem>>, %arg4: memref<1x384xf32, #tpu.memory_space<vmem>>, %arg5: memref<1x128xf32, #tpu.memory_space<vmem>>, %arg6: memref<1x128xf32, #tpu.memory_space<vmem>>, %arg7: memref<1x64x128xbf16, #tpu.memory_space<vmem>>, %arg8: memref<1x64x128xbf16, #tpu.memory_space<vmem>>, %arg9: memref<1x64x128xbf16, #tpu.memory_space<vmem>>) attributes {dimension_semantics = [#tpu.dimension_semantics<parallel>, #tpu.dimension_semantics<parallel>], iteration_bounds = array<i64: 2, 2>, scalar_prefetch = 0 : i64, scratch_operands = 0 : i64, tpu.core_type = #tpu.core_type<tc>, window_params = [{transform_indices = @transform_0, window_bounds = array<i64: 1, 64, 128>}, {pipeline_mode = #tpu.pipeline_mode<synchronous>, transform_indices = @transform_1, window_bounds = array<i64: 128, 384>}, {pipeline_mode = #tpu.pipeline_mode<synchronous>, transform_indices = @transform_2, window_bounds = array<i64: 1, 384>}, {pipeline_mode = #tpu.pipeline_mode<synchronous>, transform_indices = @transform_3, window_bounds = array<i64: 1, 128>}, {pipeline_mode = #tpu.pipeline_mode<synchronous>, transform_indices = @transform_4, window_bounds = array<i64: 1, 128>}, {transform_indices = @transform_5, window_bounds = array<i64: 1, 64, 128>}, {transform_indices = @transform_6, window_bounds = array<i64: 1, 64, 128>}, {transform_indices = @transform_7, window_bounds = array<i64: 1, 64, 128>}]} {
    %c0 = arith.constant 0 : index
    %c0_0 = arith.constant 0 : index
    %c0_1 = arith.constant 0 : index
    %0 = vector.load %arg2[%c0, %c0_0, %c0_1] : memref<1x64x128xf32, #tpu.memory_space<vmem>>, vector<1x64x128xf32>
    %1 = vector.shape_cast %0 : vector<1x64x128xf32> to vector<64x128xf32>
    %c0_2 = arith.constant 0 : index
    %c0_3 = arith.constant 0 : index
    %2 = vector.load %arg5[%c0_2, %c0_3] : memref<1x128xf32, #tpu.memory_space<vmem>>, vector<1x128xf32>
    %3 = vector.shape_cast %2 : vector<1x128xf32> to vector<128xf32>
    %c0_4 = arith.constant 0 : index
    %c0_5 = arith.constant 0 : index
    %4 = vector.load %arg6[%c0_4, %c0_5] : memref<1x128xf32, #tpu.memory_space<vmem>>, vector<1x128xf32>
    %5 = vector.shape_cast %4 : vector<1x128xf32> to vector<128xf32>
    %cst = arith.constant dense<0.000000e+00> : vector<64xf32>
    %6 = vector.multi_reduction <add>, %1, %cst [1] : vector<64x128xf32> to vector<64xf32>
    %7 = vector.shape_cast %6 : vector<64xf32> to vector<64x1xf32>
    %cst_6 = arith.constant 1.280000e+02 : f32
    %8 = vector.broadcast %cst_6 : f32 to vector<64x1xf32>
    %9 = arith.divf %7, %8 : vector<64x1xf32>
    %10 = vector.broadcast %9 : vector<64x1xf32> to vector<64x128xf32>
    %11 = arith.subf %1, %10 : vector<64x128xf32>
    %12 = arith.mulf %11, %11 : vector<64x128xf32>
    %cst_7 = arith.constant dense<0.000000e+00> : vector<64xf32>
    %13 = vector.multi_reduction <add>, %12, %cst_7 [1] : vector<64x128xf32> to vector<64xf32>
    %14 = vector.shape_cast %13 : vector<64xf32> to vector<64x1xf32>
    %cst_8 = arith.constant 0.00787401571 : f32
    %15 = vector.broadcast %cst_8 : f32 to vector<64x1xf32>
    %16 = arith.mulf %14, %15 : vector<64x1xf32>
    %17 = math.sqrt %16 : vector<64x1xf32>
    %cst_9 = arith.constant 9.99999997E-7 : f32
    %18 = vector.broadcast %cst_9 : f32 to vector<64x1xf32>
    %19 = arith.addf %17, %18 : vector<64x1xf32>
    %20 = vector.broadcast %19 : vector<64x1xf32> to vector<64x128xf32>
    %21 = arith.divf %11, %20 : vector<64x128xf32>
    %22 = vector.shape_cast %3 : vector<128xf32> to vector<1x128xf32>
    %23 = vector.broadcast %22 : vector<1x128xf32> to vector<64x128xf32>
    %24 = arith.mulf %23, %21 : vector<64x128xf32>
    %25 = vector.shape_cast %5 : vector<128xf32> to vector<1x128xf32>
    %26 = vector.broadcast %25 : vector<1x128xf32> to vector<64x128xf32>
    %27 = arith.addf %24, %26 : vector<64x128xf32>
    %28 = arith.truncf %27 : vector<64x128xf32> to vector<64x128xbf16>
    %c0_10 = arith.constant 0 : index
    %c0_11 = arith.constant 0 : index
    %29 = vector.load %arg3[%c0_10, %c0_11] : memref<128x384xbf16, #tpu.memory_space<vmem>>, vector<128x384xbf16>
    %cst_12 = arith.constant dense<0.000000e+00> : vector<64x384xf32>
    %30 = tpu.matmul %28, %29, %cst_12 {dimension_numbers = #tpu.dot_dimension_numbers<[1], [0], [0], [1], [0, 0, 1, 1], [], []>} : vector<64x128xbf16>, vector<128x384xbf16>, vector<64x384xf32> -> vector<64x384xf32>
    %c0_13 = arith.constant 0 : index
    %c0_14 = arith.constant 0 : index
    %31 = vector.load %arg4[%c0_13, %c0_14] : memref<1x384xf32, #tpu.memory_space<vmem>>, vector<1x384xf32>
    %32 = vector.shape_cast %31 : vector<1x384xf32> to vector<384xf32>
    %33 = vector.shape_cast %32 : vector<384xf32> to vector<1x384xf32>
    %34 = vector.broadcast %33 : vector<1x384xf32> to vector<64x384xf32>
    %35 = arith.addf %30, %34 : vector<64x384xf32>
    %36 = vector.extract_strided_slice %35 {offsets = [0, 0], sizes = [64, 128], strides = [1, 1]} : vector<64x384xf32> to vector<64x128xf32>
    %cst_15 = arith.constant 0.176776692 : f32
    %37 = vector.broadcast %cst_15 : f32 to vector<64x128xf32>
    %38 = arith.mulf %36, %37 : vector<64x128xf32>
    %39 = arith.truncf %38 : vector<64x128xf32> to vector<64x128xbf16>
    %c0_16 = arith.constant 0 : index
    %c0_17 = arith.constant 0 : index
    %c0_18 = arith.constant 0 : index
    %40 = vector.load %arg7[%c0_16, %c0_17, %c0_18] : memref<1x64x128xbf16, #tpu.memory_space<vmem>>, vector<1x64x128xbf16>
    %41 = vector.shape_cast %40 : vector<1x64x128xbf16> to vector<64x128xbf16>
    %42 = vector.shape_cast %39 : vector<64x128xbf16> to vector<1x64x128xbf16>
    tpu.vector_store %arg7[%c0_16, %c0_17, %c0_18], %42 {strides = array<i32>} : memref<1x64x128xbf16, #tpu.memory_space<vmem>>, vector<1x64x128xbf16>,
    %43 = vector.extract_strided_slice %35 {offsets = [0, 128], sizes = [64, 128], strides = [1, 1]} : vector<64x384xf32> to vector<64x128xf32>
    %44 = arith.truncf %43 : vector<64x128xf32> to vector<64x128xbf16>
    %c0_19 = arith.constant 0 : index
    %c0_20 = arith.constant 0 : index
    %c0_21 = arith.constant 0 : index
    %45 = vector.load %arg8[%c0_19, %c0_20, %c0_21] : memref<1x64x128xbf16, #tpu.memory_space<vmem>>, vector<1x64x128xbf16>
    %46 = vector.shape_cast %45 : vector<1x64x128xbf16> to vector<64x128xbf16>
    %47 = vector.shape_cast %44 : vector<64x128xbf16> to vector<1x64x128xbf16>
    tpu.vector_store %arg8[%c0_19, %c0_20, %c0_21], %47 {strides = array<i32>} : memref<1x64x128xbf16, #tpu.memory_space<vmem>>, vector<1x64x128xbf16>,
    %48 = vector.extract_strided_slice %35 {offsets = [0, 256], sizes = [64, 128], strides = [1, 1]} : vector<64x384xf32> to vector<64x128xf32>
    %49 = arith.truncf %48 : vector<64x128xf32> to vector<64x128xbf16>
    %c0_22 = arith.constant 0 : index
    %c0_23 = arith.constant 0 : index
    %c0_24 = arith.constant 0 : index
    %50 = vector.load %arg9[%c0_22, %c0_23, %c0_24] : memref<1x64x128xbf16, #tpu.memory_space<vmem>>, vector<1x64x128xbf16>
    %51 = vector.shape_cast %50 : vector<1x64x128xbf16> to vector<64x128xbf16>
    %52 = vector.shape_cast %49 : vector<64x128xbf16> to vector<1x64x128xbf16>
    tpu.vector_store %arg9[%c0_22, %c0_23, %c0_24], %52 {strides = array<i32>} : memref<1x64x128xbf16, #tpu.memory_space<vmem>>, vector<1x64x128xbf16>,
    return
  }
  func.func @transform_0(%arg0: i32, %arg1: i32) -> (i32, i32, i32) {
    %c0_i32 = arith.constant 0 : i32
    %c0_i32_0 = arith.constant 0 : i32
    return %arg0, %arg1, %c0_i32 : i32, i32, i32
  }
  func.func @transform_1(%arg0: i32, %arg1: i32) -> (i32, i32) {
    %c0_i32 = arith.constant 0 : i32
    %c0_i32_0 = arith.constant 0 : i32
    %c0_i32_1 = arith.constant 0 : i32
    return %c0_i32, %c0_i32_0 : i32, i32
  }
  func.func @transform_2(%arg0: i32, %arg1: i32) -> (i32, i32) {
    %c0_i32 = arith.constant 0 : i32
    %c0_i32_0 = arith.constant 0 : i32
    %c0_i32_1 = arith.constant 0 : i32
    return %c0_i32, %c0_i32_0 : i32, i32
  }
  func.func @transform_3(%arg0: i32, %arg1: i32) -> (i32, i32) {
    %c0_i32 = arith.constant 0 : i32
    %c0_i32_0 = arith.constant 0 : i32
    %c0_i32_1 = arith.constant 0 : i32
    return %c0_i32, %c0_i32_0 : i32, i32
  }
  func.func @transform_4(%arg0: i32, %arg1: i32) -> (i32, i32) {
    %c0_i32 = arith.constant 0 : i32
    %c0_i32_0 = arith.constant 0 : i32
    %c0_i32_1 = arith.constant 0 : i32
    return %c0_i32, %c0_i32_0 : i32, i32
  }
  func.func @transform_5(%arg0: i32, %arg1: i32) -> (i32, i32, i32) {
    %c0_i32 = arith.constant 0 : i32
    %c0_i32_0 = arith.constant 0 : i32
    return %arg0, %arg1, %c0_i32 : i32, i32, i32
  }
  func.func @transform_6(%arg0: i32, %arg1: i32) -> (i32, i32, i32) {
    %c0_i32 = arith.constant 0 : i32
    %c0_i32_0 = arith.constant 0 : i32
    return %arg0, %arg1, %c0_i32 : i32, i32, i32
  }
  func.func @transform_7(%arg0: i32, %arg1: i32) -> (i32, i32, i32) {
    %c0_i32 = arith.constant 0 : i32
    %c0_i32_0 = arith.constant 0 : i32
    return %arg0, %arg1, %c0_i32 : i32, i32, i32
  }
}

</mosaic_0001>

<bundles_post_ra>
// kernel: tpu_custom_call.1
= control target key start
LH: loop header
LB: loop body
LE: loop exit
PB: predicated region body
PF: predicated region fallthrough
CT: control target
= control target key end

     0   :  { %s2245_s0 = inlined_call_operand.hbm [shape: f32[2,128,128], index: 0, kind: input, shape index: {}]   ;;  %s2246_s1 = inlined_call_operand.hbm [shape: bf16[128,384], index: 1, kind: input, shape index: {}]   ;;  %s2247_s2 = inlined_call_operand.vmem [shape: f32[1,384], index: 2, kind: input, shape index: {}]   ;;  %s2248_s3 = inlined_call_operand.vmem [shape: f32[1,128], index: 3, kind: input, shape index: {}]   ;;  %s2249_s4 = inlined_call_operand.vmem [shape: f32[1,128], index: 4, kind: input, shape index: {}]   ;;  %s2250_s5 = inlined_call_operand.hbm [shape: bf16[2,128,128], index: 5, kind: output, shape index: {0}]   ;;  %s2251_s6 = inlined_call_operand.hbm [shape: bf16[2,128,128], index: 6, kind: output, shape index: {1}]   ;;  %s2252_s7 = inlined_call_operand.hbm [shape: bf16[2,128,128], index: 7, kind: output, shape index: {2}]  }
   0x1   :  { %2263 = sst [smem:[#allocation20_spill]] %s2245_s0 }
   0x2   :  { %2264 = sst [smem:[#allocation21_spill]] %s2246_s1 }
   0x3   :  { %2265 = sst [smem:[#allocation22_spill]] %s2250_s5 }
   0x4   :  { %2266 = sst [smem:[#allocation23_spill]] %s2251_s6 }
   0x5   :  { %2267 = sst [smem:[#allocation24_spill]] %s2252_s7 }
   0x6   :  { %13 = vsyncpa [#allocation3], 0 }
   0x7   :  { %15 = vsyncpa [#allocation3 + $0x1], 0 }
   0x8   :  { %16 = vsyncpa [#allocation6], 0 }
   0x9   :  { %17 = vsyncpa [#allocation4], 0 }
   0xa   :  { %19 = vsyncpa [#allocation4 + $0x1], 0 }
   0xb   :  { %20 = vsyncpa [#allocation9], 0 }
   0xc   :  { %22 = vsyncpa [#allocation9 + $0x1], 0  ;;  %s1858_s24 = smov 0   ;;  %s1860_s25 = smov 0  }
   0xd   :  { %s1862_s26 = smov 0   ;;  %s1864_s27 = smov 0  }
   0xe   :  { %s1866_s28 = smov 0   ;;  %s1868_s29 = smov 0  }
   0xf   :  { %s1870_s30 = smov 0   ;;  %s1872_s8 = smov 0  }
  0x10 LB: > { %2268 = sst [smem:[#allocation15_spill]] %s1776_s24  ;;  %s1899_s9 = sadd.s32 4294967295, %s1804_s8   ;;  %s1804_s8 = sphi %s1872_s8, %s28_s8   ;;  %s1800_s30 = sphi %s1870_s30, %s2297_s30   ;;  %s1796_s29 = sphi %s1868_s29, %s2292_s29   ;;  %s1792_s28 = sphi %s1866_s28, %s2296_s28   ;;  %s1788_s27 = sphi %s1864_s27, %s2291_s27   ;;  %s1784_s26 = sphi %s1862_s26, %s2295_s26   ;;  %s1780_s25 = sphi %s1860_s25, %s2294_s25   ;;  %s1776_s24 = sphi %s1858_s24, %s2293_s24  }
  0x11   : > { %2269 = sst [smem:[#allocation16_spill]] %s1796_s29  ;;  %s2253_s10 = sadd.s32 4294967294, %s1804_s8  }
  0x12   : > { %p62_p0 = scmp.ne.s32.totalorder %s1780_s25, %s1776_s24  ;;  %p63_p1 = scmp.eq.s32.totalorder %s1899_s9, 0 }
  0x13   : > { %p178_p3 = scmp.eq.s32.totalorder %s2253_s10, 3  ;;  %p1218_p5 = scmp.ge.s32.totalorder %s1804_s8, 1 }
  0x14   : > { %p1910_p4 = por %p63_p1, %p62_p0  ;;  %p241_p7 = scmp.lt.s32.totalorder %s1804_s8, 5 }
  0x15   : > { %p1915_p6 = por %p178_p3, %p62_p0  ;;  %s1806_s14 = smov [#allocation5]  }
  0x16   : > { %p1920_p8 = pnand %p1218_p5, %p241_p7  ;;  %s253_s15 = sshll.u32 %s1806_s14, 4  ;;  %s254_s15 = int_to_ptr.vmem [resolvable:$true] %s253_s15 }
  0x17   : > { %s2271_s12 = scalar_select %p1915_p6, 1, 0 }
  0x18   : > { %p1436_p9 = pneg %p1920_p8  ;;  %s1605_s16 = scalar_lea.vmem %s254_s15, 3072 }
  0x19   : > { %2272 = sst [smem:[#allocation17_spill]] %s2271_s12  ;;  %p1606_p12 = scmp.ne.s32.totalorder %s254_s15, %s1605_s16 }
  0x1a   : > { %p1437_p10 = pnand %p1436_p9, %p63_p1  ;;  %p1613_p3 = scmp.lt.s32.totalorder %s254_s15, %s254_s15 }
  0x1b   : > { %p1614_p2 = scmp.lt.s32.totalorder %s1605_s16, %s1605_s16 }
  0x1c   : > { %p1596_p11 = pneg %p1437_p10 }
  0x1d   : > { %p1615_p6 = por %p1614_p2, %p1613_p3 }
  0x1e   : > { %p1608_p13 = pnand %p1606_p12, %p1596_p11 }
  0x20   : > { %p1609_p0 = pneg %p1608_p13 }
  0x22   : > { %p1616_p5 = pnand %p1615_p6, %p1609_p0 }
  0x24   : > { %1619 = shalt.err (!%p1616_p5)
}
  0x25   : > { %s1807_s17 = smov 192   ;;  %s1808_s18 = smov 12  }
  0x26   : > { %s2274_s1 = sld [smem:[#allocation21_spill]]  ;;  %s37_s21 = sadd.s32 1, %s1796_s29 }
  0x27   : > { %p38_p2 = scmp.ge.s32.totalorder %s37_s21, 2  ;;  %s40_s22 = sadd.s32 1, %s1800_s30 }
  0x28   : > { %s49_s23 = sadd.s32 1, %s1784_s26  ;;  %p56_p6 = scmp.ne.s32.totalorder %s1784_s26, %s1780_s25 }
  0x29   : > { %s2299_s21 = smov (%p38_p2, %s37_s21), 0  ;;  %s2301_s22 = smov (!%p38_p2, %s40_s22), %s1800_s30 }
  0x2a   : > { %2275 = sst [smem:[#allocation18_spill]] %s2299_s21  ;;  %s45_s14 = ssub.s32 %s1796_s29, %s2299_s21 }
  0x2b   : > { %p57_p7 = scmp.eq.s32.totalorder %s1804_s8, 0  ;;  %p42_p9 = scmp.ge.s32.totalorder %s2301_s22, 2 }
  0x2c   : > { %1439 = dma.hbm_to_vmem [thread:$0]  (!%p1437_p10), %s2274_s1, 3072, %s254_s15, [#allocation6], %s1807_s17, %s1807_s17, %s1808_s18  }
  0x2d   : > { %p2276_p11 = scmp.eq.s32.totalorder %s1899_s9, 3  ;;  %p1948_p10 = por %p57_p7, %p56_p6 }
  0x2e   : > { %p1455_p13 = scmp.lt.s32.totalorder %s1804_s8, 4  ;;  %s2303_s22 = smov (%p42_p9, %s2301_s22), 0 }
  0x2f   : > { %p1944_p12 = por %p2276_p11, %p56_p6  ;;  %s276_s17 = sand.u32 1, %s1784_s26  }
  0x30   : > { %s1222_s18 = sshll.u32 %s1796_s29, 3  ;;  %s44_s19 = ssub.s32 %s1800_s30, %s2303_s22 }
  0x31   : > { %s2277_s16 = scalar_select %p1944_p12, 1, 0 }
  0x32   : > { %s46_s20 = sor.u32 %s45_s14, %s44_s19  ;;  %s1221_s10 = sshll.u32 %s276_s17, 6 }
  0x33   : > { %2278 = sst [smem:[#allocation19_spill]] %s2277_s16  ;;  %p47_p0 = scmp.eq.s32.totalorder %s46_s20, 0 }
  0x34   : > { %s1223_s1 = sshll.u32 %s1800_s30, 4  ;;  %s280_s21 = scalar_lea.vmem [#allocation2], %s1221_s10 }
  0x35   : > { %s289_s12 = sshll.u32 %s280_s21, 4  ;;  %s286_s7 = sadd.s32 %s1223_s1, %s1222_s18  ;;  %s290_s12 = int_to_ptr.vmem [resolvable:$true] %s289_s12 }
  0x36   : > { %s1961_s24 = scalar_select %p47_p0, %s1784_s26, %s49_s23  }
  0x37   : > { %s1224_s5 = sshll.u32 %s286_s7, 7  ;;  %p1967_p3 = pnand %p1455_p13, %p1948_p10 }
  0x38   : > { %s2281_s0 = sld [smem:[#allocation20_spill]]  ;;  %s277_s19 = scalar_lea.sflag [#allocation3], %s276_s17 }
  0x39   : > { %p1622_p5 = pneg %p1967_p3  ;;  %s1633_s10 = scalar_lea.vmem %s290_s12, 1024 }
  0x3a   : > { %p1634_p2 = scmp.ne.s32.totalorder %s290_s12, %s1633_s10  ;;  %s1809_s1 = smov [#allocation2]  }
  0x3b   : > { %s1638_s7 = sshll.u32 %s1809_s1, 4  ;;  %s1639_s7 = int_to_ptr.vmem [resolvable:$false] %s1638_s7 }
  0x3c   : > { %p1636_p6 = pnand %p1634_p2, %p1622_p5  ;;  %s1640_s21 = scalar_lea.vmem %s1639_s7, 2048 }
  0x3d   : > { %p1641_p9 = scmp.lt.s32.totalorder %s290_s12, %s1639_s7  ;;  %p1642_p11 = scmp.lt.s32.totalorder %s1640_s21, %s1633_s10 }
  0x3e   : > { %s288_s14 = scalar_lea.hbm %s2281_s0, %s1224_s5  ;;  %p1637_p7 = pneg %p1636_p6 }
  0x3f   : > { %p1643_p10 = por %p1642_p11, %p1641_p9 }
  0x41   : > { %p1644_p13 = pnand %p1643_p10, %p1637_p7 }
  0x43   : > { %1647 = shalt.err (!%p1644_p13)
}
  0x44   : > { %s1810_s23 = smov 128   ;;  %s1811_s29 = smov 8  }
  0x45   : > { %1443 = dma.hbm_to_vmem [thread:$0]  (!%p1967_p3), %s288_s14, 1024, %s290_s12, %s277_s19, %s1810_s23, %s1810_s23, %s1811_s29  }
  0x46   : > { %301 = sbr.rel (%p1920_p8) target bundleno = 693 (0x2b5), region = 40  ;;  %s1981_s5 = sand.u32 (!%p1920_p8), 1, %s1780_s25  }
  0x47   : > { %s1226_s16 = sshll.u32 (!%p1920_p8), %s1981_s5, 6  ;;  %s304_s15 = scalar_lea.sflag (!%p1920_p8), [#allocation3], %s1981_s5 }
  0x48   : > { %s307_s17 = scalar_lea.vmem (!%p1920_p8), [#allocation2], %s1226_s16 }
  0x4b   : > { %1759 = dma.done.wait (%p1910_p4), %s304_s15, 1024  }
  0x4c   : > { %1761 = vsyncadd (%p1910_p4), %s304_s15, 4294966272 }
  0x4d   : > { %1763 = dma.done.wait (%p63_p1), [#allocation6], 3072  }
  0x4e   : > { %1765 = vsyncadd (%p63_p1), [#allocation6], 4294964224  ;;  %v357_v0 = vld [vmem:[%s307_s17] sm:$0xff]  ;;  %v359_v1 = vld [vmem:[%s307_s17 + $0x10] sm:$0xff]  ;;  %v1812_v62 = vmov 0   ;;  %s1228_s14 = sshll.u32 %s1981_s5, 5 }
  0x4f   : > { %367 = vadd.xlane.f32.xlu0 %v357_v0  ;;  %371 = vadd.xlane.f32.xlu1 %v359_v1  ;;  %v358_v2 = vld [vmem:[%s307_s17 + $0x8] sm:$0xff]  ;;  %v360_v3 = vld [vmem:[%s307_s17 + $0x18] sm:$0xff]  ;;  %v361_v4 = vld [vmem:[%s307_s17 + $0x20] sm:$0xff]  ;;  %s2084_s19 = scalar_lea.vmem [#allocation7], %s1228_s14  ;;  %s2087_s10 = scalar_lea.vmem [#allocation8], %s1228_s14 }
  0x50   : > { %v362_v5 = vld [vmem:[%s307_s17 + $0x28] sm:$0xff]  ;;  %v363_v6 = vld [vmem:[%s307_s17 + $0x30] sm:$0xff]  ;;  %v364_v7 = vld [vmem:[%s307_s17 + $0x38] sm:$0xff]  ;;  %753 = vmatprep.mubr.bf16.mxu0 %v1812_v62  ;;  %s2091_s1 = scalar_lea.vmem [#allocation10], %s1228_s14  ;;  %s1284_s7 = sshll.u32 %s1788_s27, 3 }
  0x51   : > { %v1530_v40 = vld [vmem:[#allocation5 + $0xac] ss:$12 sps:$4 sm:$0xff]   ;;  %v1532_v41 = vld [vmem:[#allocation5 + $0xa8] ss:$12 sps:$4 sm:$0xff]   ;;  %v1535_v43 = vld [vmem:[#allocation5 + $0xb0] ss:$12 sps:$4 sm:$0xff]  }
  0x52   : > { %721 = vmatprep.subr.bf16.mxu0 %v1530_v40  ;;  %v1533_v42 = vld [vmem:[#allocation5 + $0x94] ss:$12 sps:$4 sm:$0xff]   ;;  %v1536_v44 = vld [vmem:[#allocation5 + $0x90] ss:$12 sps:$4 sm:$0xff]   ;;  %1400 = vmatprep.subr.bf16.mxu1 %v1535_v43  ;;  %v1539_v46 = vld [vmem:[#allocation5 + $0x98] ss:$12 sps:$4 sm:$0xff]  }
  0x53   : > { %369 = vadd.xlane.f32.xlu0 %v358_v2  ;;  %373 = vadd.xlane.f32.xlu1 %v360_v3  ;;  %v1537_v45 = vld [vmem:[#allocation5 + $0x7c] ss:$12 sps:$4 sm:$0xff]   ;;  %v1540_v47 = vld [vmem:[#allocation5 + $0x78] ss:$12 sps:$4 sm:$0xff]   ;;  %v1543_v49 = vld [vmem:[#allocation5 + $0x80] ss:$12 sps:$4 sm:$0xff]  }
  0x54   : > { %722 = vmatpush1.bf16.msra.mxu0 %v1532_v41  ;;  %1401 = vmatpush3.bf16.msra.mxu1 %v1535_v43  ;;  %v1541_v48 = vld [vmem:[#allocation5 + $0x64] ss:$12 sps:$4 sm:$0xff]   ;;  %v1544_v50 = vld [vmem:[#allocation5 + $0x60] ss:$12 sps:$4 sm:$0xff]   ;;  %v1547_v52 = vld [vmem:[#allocation5 + $0x68] ss:$12 sps:$4 sm:$0xff]  }
  0x55   : > { %723 = vmatprep.subr.bf16.mxu0 %v1533_v42  ;;  %1402 = vmatprep.subr.bf16.mxu1 %v1539_v46  ;;  %v1545_v51 = vld [vmem:[#allocation5 + $0x4c] ss:$12 sps:$4 sm:$0xff]   ;;  %v1548_v53 = vld [vmem:[#allocation5 + $0x48] ss:$12 sps:$4 sm:$0xff]   ;;  %v1551_v55 = vld [vmem:[#allocation5 + $0x50] ss:$12 sps:$4 sm:$0xff]  }
  0x56   : > { %v1549_v54 = vld [vmem:[#allocation5 + $0x34] ss:$12 sps:$4 sm:$0xff]   ;;  %v1552_v56 = vld [vmem:[#allocation5 + $0x30] ss:$12 sps:$4 sm:$0xff]   ;;  %v1555_v58 = vld [vmem:[#allocation5 + $0x38] ss:$12 sps:$4 sm:$0xff]  }
  0x57   : > { %375 = vadd.xlane.f32.xlu0 %v361_v4  ;;  %377 = vadd.xlane.f32.xlu1 %v362_v5  ;;  %v1553_v57 = vld [vmem:[#allocation5 + $0x1c] ss:$12 sps:$4 sm:$0xff]   ;;  %v1556_v59 = vld [vmem:[#allocation5 + $0x18] ss:$12 sps:$4 sm:$0xff]   ;;  %v1559_v61 = vld [vmem:[#allocation5 + $0x20] ss:$12 sps:$4 sm:$0xff]  }
  0x58   : > { %724 = vmatpush1.bf16.msra.mxu0 %v1536_v44  ;;  %1403 = vmatpush3.bf16.msra.mxu1 %v1539_v46  ;;  %v1557_v60 = vld [vmem:[#allocation5 + $0x4] ss:$12 sps:$4 sm:$0xff]   ;;  %v1560_v63 = vld [vmem:[#allocation5] ss:$12 sps:$4 sm:$0xff]   ;;  %s1285_s21 = sshll.u32 %s1792_s28, 4  ;;  %s1013_s23 = sshll.u32 %s2084_s19, 4  ;;  %s2115_s23 = int_to_ptr.vmem [resolvable:$true] %s1013_s23 }
  0x59   : > { %725 = vmatprep.subr.bf16.mxu0 %v1537_v45  ;;  %1404 = vmatprep.subr.bf16.mxu1 %v1543_v49  ;;  %s1010_s29 = sadd.s32 %s1285_s21, %s1284_s7  ;;  %s1031_s16 = sshll.u32 %s2087_s10, 4  ;;  %s2117_s16 = int_to_ptr.vmem [resolvable:$true] %s1031_s16 }
  0x5a   : > { %s992_s15 = sand.u32 1, %s1899_s9   ;;  %s1286_s27 = sshll.u32 %s1010_s29, 6 }
  0x5b   : > { %379 = vadd.xlane.f32.xlu0 %v363_v6  ;;  %381 = vadd.xlane.f32.xlu1 %v364_v7  ;;  %s1049_s28 = sshll.u32 %s2091_s1, 4  ;;  %s2283_s11 = sld [smem:[#allocation23_spill]]  ;;  %s2132_s28 = int_to_ptr.vmem [resolvable:$true] %s1049_s28 }
  0x5c   : > { %726 = vmatpush1.bf16.msra.mxu0 %v1540_v47  ;;  %1405 = vmatpush3.bf16.msra.mxu1 %v1543_v49  ;;  %s2284_s20 = sld [smem:[#allocation22_spill]]  ;;  %s2141_s0 = scalar_lea.sflag [#allocation9], %s992_s15 }
  0x5d   : > { %727 = vmatprep.subr.bf16.mxu0 %v1541_v48  ;;  %1406 = vmatprep.subr.bf16.mxu1 %v1547_v52  ;;  %s2285_s21 = sld [smem:[#allocation24_spill]]  ;;  %s1648_s9 = scalar_lea.vmem %s2117_s16, 512 }
  0x5e   : > { %p1649_p1 = scmp.ne.s32.totalorder %s2117_s16, %s1648_s9  ;;  %s1813_s6 = smov [#allocation8]  }
  0x5f   : > { %s1652_s13 = sshll.u32 %s1813_s6, 4  ;;  %s1653_s13 = int_to_ptr.vmem [resolvable:$false] %s1652_s13 }
  0x60   : > { %728 = vmatpush1.bf16.msra.mxu0 %v1544_v50  ;;  %1407 = vmatpush3.bf16.msra.mxu1 %v1547_v52  ;;  %p1650_p4 = pnand %p1649_p1, %p1944_p12  ;;  %s1654_s18 = scalar_lea.vmem %s1653_s13, 1024 }
  0x61   : > { %729 = vmatprep.subr.bf16.mxu0 %v1545_v51  ;;  %1408 = vmatprep.subr.bf16.mxu1 %v1551_v55  ;;  %s2125_s12 = scalar_lea.hbm %s2283_s11, %s1286_s27  ;;  %p1655_p0 = scmp.lt.s32.totalorder %s2117_s16, %s1653_s13 }
  0x62   : > { %s2130_s14 = scalar_lea.hbm %s2284_s20, %s1286_s27  ;;  %p1651_p8 = pneg %p1650_p4 }
  0x63   : > { %s2139_s29 = scalar_lea.hbm %s2285_s21, %s1286_s27  ;;  %p1656_p3 = scmp.lt.s32.totalorder %s1654_s18, %s1648_s9 }
  0x64   : > { %730 = vmatpush1.bf16.msra.mxu0 %v1548_v53  ;;  %1409 = vmatpush3.bf16.msra.mxu1 %v1551_v55 }
  0x65   : > { %731 = vmatprep.subr.bf16.mxu0 %v1549_v54  ;;  %1410 = vmatprep.subr.bf16.mxu1 %v1555_v58  ;;  %p1657_p5 = por %p1656_p3, %p1655_p0 }
  0x67   : > { %p1658_p2 = pnand %p1657_p5, %p1651_p8 }
  0x68   : > { %732 = vmatpush1.bf16.msra.mxu0 %v1552_v56  ;;  %1411 = vmatpush3.bf16.msra.mxu1 %v1555_v58 }
  0x69   : > { %733 = vmatprep.subr.bf16.mxu0 %v1553_v57  ;;  %1412 = vmatprep.subr.bf16.mxu1 %v1559_v61 }
  0x6c   : > { %734 = vmatpush1.bf16.msra.mxu0 %v1556_v59  ;;  %1413 = vmatpush3.bf16.msra.mxu1 %v1559_v61 }
  0x6d   : > { %735 = vmatprep.subr.bf16.mxu0 %v1557_v60 }
  0x70   : > { %736 = vmatpush1.bf16.msra.mxu0 %v1560_v63 }
  0xd8   : > { %v368_v8 = vpop.xlane.xlu0 %367  ;;  %v372_v9 = vpop.xlane.xlu1 %371 }
  0xd9   : > { %v384_v10 = vmul.f32 0.0078125, %v368_v8  ;;  %v386_v11 = vmul.f32 0.0078125, %v372_v9 }
  0xdb   : > { %v1993_v12 = vsub.f32 %v357_v0, %v384_v10  ;;  %v1995_v13 = vsub.f32 %v359_v1, %v386_v11  ;;  %v1561_v0 = vld [vmem:[#allocation5 + $0x8] ss:$12 sps:$4 sm:$0xff]  }
  0xdc   : > { %v370_v14 = vpop.xlane.xlu0 %369  ;;  %v374_v15 = vpop.xlane.xlu1 %373  ;;  %1414 = vmatprep.subr.bf16.mxu1 %v1561_v0 }
  0xdd   : > { %v385_v16 = vmul.f32 0.0078125, %v370_v14  ;;  %v400_v17 = vmul.f32 %v1993_v12, %v1993_v12  ;;  %v387_v18 = vmul.f32 0.0078125, %v374_v15  ;;  %v402_v21 = vmul.f32 %v1995_v13, %v1995_v13  ;;  %1415 = vmatpush3.bf16.msra.mxu1 %v1561_v0 }
  0xdf   : > { %v1999_v19 = vsub.f32 %v358_v2, %v385_v16  ;;  %408 = vadd.xlane.f32.xlu0 %v400_v17  ;;  %v2001_v20 = vsub.f32 %v360_v3, %v387_v18 }
  0xe0   : > { %v376_v22 = vpop.xlane.xlu0 %375  ;;  %v378_v23 = vpop.xlane.xlu1 %377 }
  0xe1   : > { %v388_v24 = vmul.f32 0.0078125, %v376_v22  ;;  %v401_v25 = vmul.f32 %v1999_v19, %v1999_v19  ;;  %v389_v26 = vmul.f32 0.0078125, %v378_v23  ;;  %v403_v29 = vmul.f32 %v2001_v20, %v2001_v20 }
  0xe3   : > { %v2007_v27 = vsub.f32 %v361_v4, %v388_v24  ;;  %412 = vadd.xlane.f32.xlu0 %v402_v21  ;;  %410 = vadd.xlane.f32.xlu1 %v401_v25  ;;  %v2009_v28 = vsub.f32 %v362_v5, %v389_v26 }
  0xe4   : > { %v380_v30 = vpop.xlane.xlu0 %379  ;;  %v382_v31 = vpop.xlane.xlu1 %381 }
  0xe5   : > { %v390_v32 = vmul.f32 0.0078125, %v380_v30  ;;  %v404_v33 = vmul.f32 %v2007_v27, %v2007_v27  ;;  %v391_v34 = vmul.f32 0.0078125, %v382_v31  ;;  %v405_v37 = vmul.f32 %v2009_v28, %v2009_v28 }
  0xe7   : > { %v2015_v35 = vsub.f32 %v363_v6, %v390_v32  ;;  %414 = vadd.xlane.f32.xlu1 %v403_v29  ;;  %416 = vadd.xlane.f32.xlu0 %v404_v33  ;;  %v2017_v36 = vsub.f32 %v364_v7, %v391_v34 }
  0xe9   : > { %v406_v38 = vmul.f32 %v2015_v35, %v2015_v35  ;;  %v407_v39 = vmul.f32 %v2017_v36, %v2017_v36 }
  0xeb   : > { %418 = vadd.xlane.f32.xlu1 %v405_v37  ;;  %420 = vadd.xlane.f32.xlu0 %v406_v38 }
  0xef   : > { %422 = vadd.xlane.f32.xlu1 %v407_v39 }
 0x168   : > { %v409_v1 = vpop.xlane.xlu0 %408 }
 0x169   : > { %v424_v2 = vmul.f32 0.007874016, %v409_v1 }
 0x16b   : > { %1562 = vrsqrt.f32 %v424_v2  ;;  %vm434_vm0 = vcmp.eq.f32.partialorder %v424_v2, inf  ;;  %v437_v23 = vand.u32 2147483648, %v424_v2  ;;  %vm436_vm1 = vcmp.eq.f32.partialorder %v424_v2, 0.0 }
 0x16c   : > { %v411_v3 = vpop.xlane.xlu1 %410  ;;  %v413_v4 = vpop.xlane.xlu0 %412 }
 0x16d   : > { %v425_v5 = vmul.f32 0.007874016, %v411_v3  ;;  %v426_v6 = vmul.f32 0.007874016, %v413_v4 }
 0x16f   : > { %1564 = vrsqrt.f32 %v425_v5  ;;  %vm441_vm2 = vcmp.eq.f32.partialorder %v425_v5, inf  ;;  %vm443_vm3 = vcmp.eq.f32.partialorder %v425_v5, 0.0  ;;  %v444_v32 = vand.u32 2147483648, %v425_v5 }
 0x170   : > { %1566 = vrsqrt.f32 %v426_v6  ;;  %v415_v7 = vpop.xlane.xlu1 %414  ;;  %v417_v8 = vpop.xlane.xlu0 %416  ;;  %vm448_vm4 = vcmp.eq.f32.partialorder %v426_v6, inf  ;;  %vm450_vm5 = vcmp.eq.f32.partialorder %v426_v6, 0.0  ;;  %v451_v37 = vand.u32 2147483648, %v426_v6 }
 0x171   : > { %v427_v9 = vmul.f32 0.007874016, %v415_v7  ;;  %v428_v10 = vmul.f32 0.007874016, %v417_v8 }
 0x173   : > { %1568 = vrsqrt.f32 %v427_v9  ;;  %vm455_vm6 = vcmp.eq.f32.partialorder %v427_v9, inf  ;;  %vm457_vm7 = vcmp.eq.f32.partialorder %v427_v9, 0.0  ;;  %v458_v45 = vand.u32 2147483648, %v427_v9 }
 0x174   : > { %1570 = vrsqrt.f32 %v428_v10  ;;  %v419_v11 = vpop.xlane.xlu1 %418  ;;  %v421_v14 = vpop.xlane.xlu0 %420  ;;  %vm462_vm8 = vcmp.eq.f32.partialorder %v428_v10, inf  ;;  %vm464_vm9 = vcmp.eq.f32.partialorder %v428_v10, 0.0  ;;  %v465_v49 = vand.u32 2147483648, %v428_v10 }
 0x175   : > { %v2026_v15 = vmul.f32 0.007874016, %v419_v11  ;;  %v2028_v16 = vmul.f32 0.007874016, %v421_v14  ;;  %v1231_v14 = vld [vmem:[%s2248_s3] ss:$0 sm:$0xff] }
 0x177   : > { %1572 = vrsqrt.f32 %v2026_v15  ;;  %vm469_vm10 = vcmp.eq.f32.partialorder %v2026_v15, inf  ;;  %vm476_vm11 = vcmp.eq.f32.partialorder %v2028_v16, inf  ;;  %v479_v57 = vand.u32 2147483648, %v2028_v16 }
 0x178   : > { %v1563_v17 = vpop.eup %1562  ;;  %1574 = vrsqrt.f32 %v2028_v16  ;;  %v423_v18 = vpop.xlane.xlu1 %422  ;;  %v472_v59 = vand.u32 2147483648, %v2026_v15  ;;  %vm478_vm12 = vcmp.eq.f32.partialorder %v2028_v16, 0.0  ;;  %vm471_vm13 = vcmp.eq.f32.partialorder %v2026_v15, 0.0 }
 0x179   : > { %v433_v21 = vmul.f32 %v1563_v17, %v424_v2  ;;  %v2032_v22 = vmul.f32 0.007874016, %v423_v18 }
 0x17b   : > { %v435_v24 = vsel %vm434_vm0, %v424_v2, %v433_v21  ;;  %1576 = vrsqrt.f32 %v2032_v22  ;;  %vm483_vm14 = vcmp.eq.f32.partialorder %v2032_v22, inf  ;;  %vm485_vm15 = vcmp.eq.f32.partialorder %v2032_v22, 0.0  ;;  %v1232_v21 = vld [vmem:[%s2249_s4] ss:$0 sm:$0xff] }
 0x17c   : > { %v1565_v25 = vpop.eup %1564  ;;  %v438_v26 = vsel %vm436_vm1, %v437_v23, %v435_v24 }
 0x17d   : > { %v1567_v29 = vpop.eup %1566  ;;  %v488_v30 = vadd.f32 1e-06, %v438_v26  ;;  %v440_v31 = vmul.f32 %v1565_v25, %v425_v5 }
 0x17e   : > { %v447_v33 = vmul.f32 %v1567_v29, %v426_v6 }
 0x17f   : > { %1578 = vrcp.f32 %v488_v30  ;;  %v442_v34 = vsel %vm441_vm2, %v425_v5, %v440_v31 }
 0x180   : > { %v1569_v38 = vpop.eup %1568  ;;  %v445_v39 = vsel %vm443_vm3, %v444_v32, %v442_v34  ;;  %v449_v40 = vsel %vm448_vm4, %v426_v6, %v447_v33  ;;  %v486_v6 = vand.u32 2147483648, %v2032_v22 }
 0x181   : > { %v1571_v41 = vpop.eup %1570  ;;  %v489_v42 = vadd.f32 1e-06, %v445_v39  ;;  %v452_v43 = vsel %vm450_vm5, %v451_v37, %v449_v40  ;;  %v454_v44 = vmul.f32 %v1569_v38, %v427_v9 }
 0x182   : > { %v490_v46 = vadd.f32 1e-06, %v452_v43  ;;  %v461_v47 = vmul.f32 %v1571_v41, %v428_v10 }
 0x183   : > { %1580 = vrcp.f32 %v489_v42  ;;  %v456_v48 = vsel %vm455_vm6, %v427_v9, %v454_v44 }
 0x184   : > { %v1573_v50 = vpop.eup %1572  ;;  %1582 = vrcp.f32 %v490_v46  ;;  %v459_v51 = vsel %vm457_vm7, %v458_v45, %v456_v48  ;;  %v463_v52 = vsel %vm462_vm8, %v428_v10, %v461_v47 }
 0x185   : > { %v1575_v53 = vpop.eup %1574  ;;  %v491_v54 = vadd.f32 1e-06, %v459_v51  ;;  %v466_v55 = vsel %vm464_vm9, %v465_v49, %v463_v52  ;;  %v468_v56 = vmul.f32 %v1573_v50, %v2026_v15 }
 0x186   : > { %v492_v58 = vadd.f32 1e-06, %v466_v55  ;;  %v475_v60 = vmul.f32 %v1575_v53, %v2028_v16 }
 0x187   : > { %1584 = vrcp.f32 %v491_v54  ;;  %v470_v61 = vsel %vm469_vm10, %v2026_v15, %v468_v56 }
 0x188   : > { %v1577_v63 = vpop.eup %1576  ;;  %1586 = vrcp.f32 %v492_v58  ;;  %v473_v0 = vsel %vm471_vm13, %v472_v59, %v470_v61  ;;  %v477_v1 = vsel %vm476_vm11, %v2028_v16, %v475_v60 }
 0x189   : > { %v493_v2 = vadd.f32 1e-06, %v473_v0  ;;  %v480_v3 = vsel %vm478_vm12, %v479_v57, %v477_v1  ;;  %v482_v4 = vmul.f32 %v1577_v63, %v2032_v22 }
 0x18a   : > { %v494_v5 = vadd.f32 1e-06, %v480_v3 }
 0x18b   : > { %1588 = vrcp.f32 %v493_v2  ;;  %v484_v7 = vsel %vm483_vm14, %v2032_v22, %v482_v4 }
 0x18c   : > { %v1579_v8 = vpop.eup %1578  ;;  %1590 = vrcp.f32 %v494_v5  ;;  %v487_v9 = vsel %vm485_vm15, %v486_v6, %v484_v7 }
 0x18d   : > { %v495_v10 = vadd.f32 1e-06, %v487_v9  ;;  %v497_v11 = vmul.f32 %v1579_v8, %v1993_v12 }
 0x18f   : > { %1592 = vrcp.f32 %v495_v10  ;;  %v518_v18 = vmul.f32 %v1231_v14, %v497_v11 }
 0x190   : > { %v1581_v15 = vpop.eup %1580 }
 0x191   : > { %v1583_v16 = vpop.eup %1582  ;;  %v499_v17 = vmul.f32 %v1581_v15, %v1999_v19  ;;  %v532_v26 = vadd.f32 %v1232_v21, %v518_v18 }
 0x192   : > { %v501_v22 = vmul.f32 %v1583_v16, %v1995_v13 }
 0x193   : > { %v519_v23 = vmul.f32 %v1231_v14, %v499_v17 }
 0x194   : > { %v1585_v24 = vpop.eup %1584  ;;  %v520_v25 = vmul.f32 %v1231_v14, %v501_v22 }
 0x195   : > { %v1587_v12 = vpop.eup %1586  ;;  %v533_v29 = vadd.f32 %v1232_v21, %v519_v23  ;;  %v503_v30 = vmul.f32 %v1585_v24, %v2001_v20 }
 0x196   : > { %v505_v31 = vmul.f32 %v1587_v12, %v2007_v27  ;;  %v534_v34 = vadd.f32 %v1232_v21, %v520_v25 }
 0x197   : > { %v540_v32 = vpack.c.bf16 %v533_v29, %v532_v26  ;;  %v521_v33 = vmul.f32 %v1231_v14, %v503_v30 }
 0x198   : > { %v1589_v19 = vpop.eup %1588  ;;  %v522_v39 = vmul.f32 %v1231_v14, %v505_v31 }
 0x199   : > { %v1591_v37 = vpop.eup %1590  ;;  %754 = vmatmul.mubr.bf16.vlgmr.msra.gmra.mxu0 %v540_v32  ;;  %1416 = vmatprep.mubr.bf16.mxu1 %v540_v32  ;;  %v535_v38 = vadd.f32 %v1232_v21, %v521_v33  ;;  %v507_v13 = vmul.f32 %v1589_v19, %v2009_v28 }
 0x19a   : > { %763 = vmatprep.mubr.bf16.mxu0 %v1812_v62  ;;  %v509_v40 = vmul.f32 %v1591_v37, %v2015_v35  ;;  %v536_v27 = vadd.f32 %v1232_v21, %v522_v39  ;;  %v578_v35 = vlaneseq }
 0x19b   : > { %v541_v41 = vpack.c.bf16 %v535_v38, %v534_v34  ;;  %v523_v42 = vmul.f32 %v1231_v14, %v507_v13 }
 0x19c   : > { %v1593_v20 = vpop.eup %1592  ;;  %v524_v45 = vmul.f32 %v1231_v14, %v509_v40  ;;  %v579_v50 = vshrl.u32 %v578_v35, 7 }
 0x19d   : > { %1417 = vmatmul.mubr.bf16.vlgmr.msra.gmra.mxu1 %v541_v41  ;;  %v537_v43 = vadd.f32 %v1232_v21, %v523_v42  ;;  %v511_v44 = vmul.f32 %v1593_v20, %v2017_v36  ;;  %v576_v36 = vld [vmem:[%s2247_s2] sm:$0x7] }
 0x19e   : > { %v538_v48 = vadd.f32 %v1232_v21, %v524_v45  ;;  %v580_v51 = vsub.s32 0, %v579_v50  ;;  %v584_v53 = vsub.s32 1, %v579_v50  ;;  %v588_v55 = vsub.s32 2, %v579_v50 }
 0x19f   : > { %v542_v46 = vpack.c.bf16 %v537_v43, %v536_v27  ;;  %v525_v47 = vmul.f32 %v1231_v14, %v511_v44 }
 0x1a0   : > { %v2075_v52 = vrot.slane %v576_v36, %v580_v51  ;;  %v2078_v58 = vrot.slane %v576_v36, %v584_v53  ;;  %v589_v61 = vrot.slane %v576_v36, %v588_v55 }
 0x1a1   : > { %764 = vmatmul.mubr.bf16.gmra.mxu0 %v541_v41  ;;  %1420 = vmatprep.mubr.bf16.mxu1 %v542_v46  ;;  %v539_v28 = vadd.f32 %v1232_v21, %v525_v47 }
 0x1a2   : > { %773 = vmatprep.mubr.bf16.mxu0 %v1812_v62 }
 0x1a3   : > { %v543_v49 = vpack.c.bf16 %v539_v28, %v538_v48 }
 0x1a5   : > { %1421 = vmatmul.mubr.bf16.gmra.mxu1 %v543_v49 }
 0x1a9   : > { %774 = vmatmul.mubr.bf16.gmra.mxu0 %v542_v46 }
 0x1aa   : > { %783 = vmatprep.mubr.bf16.mxu0 %v1812_v62 }
 0x1b1   : > { %784 = vmatmul.mubr.bf16.gmra.mxu0 %v543_v49 }
 0x259   : > { %v755_v54 = vpop.f32.mrf.mxu0 }
 0x25a   : > { %v756_v57 = vadd.f32 %v755_v54, %v2075_v52 }
 0x25b   : > { %v757_v56 = vpop.f32.mrf.mxu0 }
 0x25c   : > { %v859_v1 = vmul.f32 0.17677669, %v756_v57  ;;  %v758_v2 = vadd.f32 %v757_v56, %v2078_v58 }
 0x25d   : > { %v759_v59 = vpop.f32.mrf.mxu0  ;;  %v1418_v62 = vpop.f32.mrf.mxu1 }
 0x25e   : > { %v760_v60 = vadd.f32 %v759_v59, %v2075_v52  ;;  %v837_v8 = vadd.f32 %v1418_v62, %v589_v61 }
 0x25f   : > { %v761_v63 = vpop.f32.mrf.mxu0  ;;  %v828_v0 = vpop.f32.mrf.mxu1 }
 0x260   : > { %v860_v3 = vmul.f32 0.17677669, %v760_v60  ;;  %v762_v4 = vadd.f32 %v761_v63, %v2078_v58  ;;  %v829_v15 = vadd.f32 %v828_v0, %v589_v61 }
 0x261   : > { %v765_v5 = vpop.f32.mrf.mxu0  ;;  %v1419_v6 = vpop.f32.mrf.mxu1 }
 0x262   : > { %v1322_v7 = vpack.c.bf16 %v860_v3, %v859_v1  ;;  %v1342_v9 = vpack.c.bf16 %v762_v4, %v758_v2  ;;  %v840_v10 = vadd.f32 %v1419_v6, %v589_v61  ;;  %v766_v16 = vadd.f32 %v765_v5, %v2075_v52 }
 0x263   : > { %v767_v11 = vpop.f32.mrf.mxu0  ;;  %v831_v14 = vpop.f32.mrf.mxu1 }
 0x264   : > { %1323 = vst [vmem:[%s2084_s19] sm:$0xff] %v1322_v7   ;;  %1343 = vst [vmem:[%s2087_s10] sm:$0xff] %v1342_v9   ;;  %v1367_v17 = vpack.c.bf16 %v840_v10, %v837_v8  ;;  %v832_v18 = vadd.f32 %v831_v14, %v589_v61  ;;  %v861_v26 = vmul.f32 0.17677669, %v766_v16  ;;  %v768_v29 = vadd.f32 %v767_v11, %v2078_v58 }
 0x265   : > { %v769_v21 = vpop.f32.mrf.mxu0  ;;  %v1422_v22 = vpop.f32.mrf.mxu1 }
 0x266   : > { %1385 = vst [vmem:[%s2091_s1 + $0x8] sm:$0xff] %v1367_v17   ;;  %v1362_v23 = vpack.c.bf16 %v832_v18, %v829_v15  ;;  %v770_v24 = vadd.f32 %v769_v21, %v2075_v52  ;;  %v853_v34 = vadd.f32 %v1422_v22, %v589_v61 }
 0x267   : > { %v771_v25 = vpop.f32.mrf.mxu0  ;;  %v844_v12 = vpop.f32.mrf.mxu1 }
 0x268   : > { %1363 = vst [vmem:[%s2091_s1] sm:$0xff] %v1362_v23   ;;  %v862_v30 = vmul.f32 0.17677669, %v770_v24  ;;  %v772_v31 = vadd.f32 %v771_v25, %v2078_v58  ;;  %v845_v40 = vadd.f32 %v844_v12, %v589_v61 }
 0x269   : > { %v775_v32 = vpop.f32.mrf.mxu0  ;;  %v1423_v33 = vpop.f32.mrf.mxu1 }
 0x26a   : > { %v1327_v19 = vpack.c.bf16 %v862_v30, %v861_v26  ;;  %v1347_v37 = vpack.c.bf16 %v772_v31, %v768_v29  ;;  %v856_v38 = vadd.f32 %v1423_v33, %v589_v61  ;;  %v776_v41 = vadd.f32 %v775_v32, %v2075_v52 }
 0x26b   : > { %v777_v13 = vpop.f32.mrf.mxu0  ;;  %v847_v39 = vpop.f32.mrf.mxu1 }
 0x26c   : > { %1379 = vst [vmem:[%s2084_s19 + $0x8] sm:$0xff] %v1327_v19   ;;  %1382 = vst [vmem:[%s2087_s10 + $0x8] sm:$0xff] %v1347_v37   ;;  %v1377_v42 = vpack.c.bf16 %v856_v38, %v853_v34  ;;  %v848_v20 = vadd.f32 %v847_v39, %v589_v61  ;;  %v863_v46 = vmul.f32 0.17677669, %v776_v41  ;;  %v778_v47 = vadd.f32 %v777_v13, %v2078_v58 }
 0x26d   : > { %v779_v27 = vpop.f32.mrf.mxu0 }
 0x26e   : > { %1387 = vst [vmem:[%s2091_s1 + $0x18] sm:$0xff] %v1377_v42   ;;  %v1372_v43 = vpack.c.bf16 %v848_v20, %v845_v40  ;;  %v780_v44 = vadd.f32 %v779_v27, %v2075_v52 }
 0x26f   : > { %v781_v45 = vpop.f32.mrf.mxu0 }
 0x270   : > { %1386 = vst [vmem:[%s2091_s1 + $0x10] sm:$0xff] %v1372_v43   ;;  %v864_v48 = vmul.f32 0.17677669, %v780_v44  ;;  %v782_v28 = vadd.f32 %v781_v45, %v2078_v58 }
 0x271   : > { %v785_v49 = vpop.f32.mrf.mxu0 }
 0x272   : > { %v1332_v35 = vpack.c.bf16 %v864_v48, %v863_v46  ;;  %v1352_v50 = vpack.c.bf16 %v782_v28, %v778_v47  ;;  %v786_v36 = vadd.f32 %v785_v49, %v2075_v52 }
 0x273   : > { %v787_v51 = vpop.f32.mrf.mxu0 }
 0x274   : > { %1380 = vst [vmem:[%s2084_s19 + $0x10] sm:$0xff] %v1332_v35   ;;  %1383 = vst [vmem:[%s2087_s10 + $0x10] sm:$0xff] %v1352_v50   ;;  %v865_v56 = vmul.f32 0.17677669, %v786_v36  ;;  %v788_v57 = vadd.f32 %v787_v51, %v2078_v58 }
 0x275   : > { %v789_v53 = vpop.f32.mrf.mxu0 }
 0x276   : > { %v790_v54 = vadd.f32 %v789_v53, %v2075_v52 }
 0x277   : > { %v791_v55 = vpop.f32.mrf.mxu0 }
 0x278   : > { %v866_v59 = vmul.f32 0.17677669, %v790_v54  ;;  %v792_v62 = vadd.f32 %v791_v55, %v2078_v58 }
 0x27a   : > { %v1337_v52 = vpack.c.bf16 %v866_v59, %v865_v56  ;;  %v1357_v60 = vpack.c.bf16 %v792_v62, %v788_v57 }
 0x27c   : > { %1381 = vst [vmem:[%s2084_s19 + $0x18] sm:$0xff] %v1337_v52   ;;  %1384 = vst [vmem:[%s2087_s10 + $0x18] sm:$0xff] %v1357_v60  }
 0x27d   : > { %1661 = shalt.err (!%p1658_p2)
}
 0x27e   : > { %s1662_s19 = scalar_lea.hbm %s2125_s12, 512  ;;  %s1666_s27 = scalar_lea.hbm %s2283_s11, 2048 }
 0x27f   : > { %p1663_p6 = scmp.ne.s32.totalorder %s2125_s12, %s1662_s19  ;;  %p1667_p11 = scmp.lt.s32.totalorder %s2125_s12, %s2283_s11 }
 0x280   : > { %p1668_p10 = scmp.lt.s32.totalorder %s1666_s27, %s1662_s19 }
 0x281   : > { %p1664_p7 = pnand %p1663_p6, %p1944_p12 }
 0x282   : > { %p1669_p13 = por %p1668_p10, %p1667_p11 }
 0x283   : > { %p1665_p9 = pneg %p1664_p7 }
 0x285   : > { %p1670_p1 = pnand %p1669_p13, %p1665_p9 }
 0x287   : > { %1673 = shalt.err (!%p1670_p1)
}
 0x288   : > { %s1814_s9 = smov 64   ;;  %s1815_s6 = smov 4  }
 0x289   : > { %1431 = dma.vmem_to_hbm [thread:$0]  (%p1944_p12), %s2117_s16, 512, %s2125_s12, %s2141_s0, %s1814_s9, %s1814_s9, %s1815_s6  }
 0x28a   : > { %s988_s13 = scalar_lea.sflag [#allocation4], %s1981_s5  ;;  %s1674_s18 = scalar_lea.vmem %s2115_s23, 512 }
 0x28b   : > { %p1675_p4 = scmp.ne.s32.totalorder %s2115_s23, %s1674_s18  ;;  %s1816_s19 = smov [#allocation7]  }
 0x28c   : > { %s1678_s10 = sshll.u32 %s1816_s19, 4  ;;  %s1679_s10 = int_to_ptr.vmem [resolvable:$false] %s1678_s10 }
 0x28d   : > { %p1676_p8 = pnand %p1675_p4, %p1944_p12  ;;  %s1680_s15 = scalar_lea.vmem %s1679_s10, 1024 }
 0x28e   : > { %p1681_p3 = scmp.lt.s32.totalorder %s2115_s23, %s1679_s10  ;;  %p1682_p5 = scmp.lt.s32.totalorder %s1680_s15, %s1674_s18 }
 0x28f   : > { %p1677_p0 = pneg %p1676_p8 }
 0x290   : > { %p1683_p2 = por %p1682_p5, %p1681_p3 }
 0x292   : > { %p1684_p6 = pnand %p1683_p2, %p1677_p0 }
 0x294   : > { %1687 = shalt.err (!%p1684_p6)
}
 0x295   : > { %s1688_s16 = scalar_lea.hbm %s2130_s14, 512  ;;  %s1692_s27 = scalar_lea.hbm %s2284_s20, 2048 }
 0x296   : > { %p1689_p7 = scmp.ne.s32.totalorder %s2130_s14, %s1688_s16  ;;  %p1693_p10 = scmp.lt.s32.totalorder %s2130_s14, %s2284_s20 }
 0x297   : > { %p1694_p13 = scmp.lt.s32.totalorder %s1692_s27, %s1688_s16 }
 0x298   : > { %p1690_p9 = pnand %p1689_p7, %p1944_p12 }
 0x299   : > { %p1695_p1 = por %p1694_p13, %p1693_p10 }
 0x29a   : > { %p1691_p11 = pneg %p1690_p9 }
 0x29c   : > { %p1696_p4 = pnand %p1695_p1, %p1691_p11 }
 0x29e   : > { %1699 = shalt.err (!%p1696_p4)
}
 0x29f   : > { %1430 = dma.vmem_to_hbm [thread:$0]  (%p1944_p12), %s2115_s23, 512, %s2130_s14, %s988_s13, %s1814_s9, %s1814_s9, %s1815_s6  }
 0x2a0   : > { %s1700_s18 = scalar_lea.vmem %s2132_s28, 512  ;;  %s1817_s19 = smov [#allocation10]  }
 0x2a1   : > { %p1701_p8 = scmp.ne.s32.totalorder %s2132_s28, %s1700_s18  ;;  %s1704_s10 = sshll.u32 %s1817_s19, 4  ;;  %s1705_s10 = int_to_ptr.vmem [resolvable:$false] %s1704_s10 }
 0x2a2   : > { %s1706_s15 = scalar_lea.vmem %s1705_s10, 1024  ;;  %p1707_p5 = scmp.lt.s32.totalorder %s2132_s28, %s1705_s10 }
 0x2a3   : > { %p1702_p0 = pnand %p1701_p8, %p1944_p12  ;;  %p1708_p2 = scmp.lt.s32.totalorder %s1706_s15, %s1700_s18 }
 0x2a5   : > { %p1703_p3 = pneg %p1702_p0  ;;  %p1709_p6 = por %p1708_p2, %p1707_p5 }
 0x2a7   : > { %p1710_p7 = pnand %p1709_p6, %p1703_p3 }
 0x2a9   : > { %1713 = shalt.err (!%p1710_p7)
}
 0x2aa   : > { %s1714_s16 = scalar_lea.hbm %s2139_s29, 512  ;;  %s1718_s13 = scalar_lea.hbm %s2285_s21, 2048 }
 0x2ab   : > { %p1715_p9 = scmp.ne.s32.totalorder %s2139_s29, %s1714_s16  ;;  %p1719_p13 = scmp.lt.s32.totalorder %s2139_s29, %s2285_s21 }
 0x2ac   : > { %p1720_p1 = scmp.lt.s32.totalorder %s1718_s13, %s1714_s16 }
 0x2ad   : > { %p1716_p11 = pnand %p1715_p9, %p1944_p12 }
 0x2ae   : > { %p1721_p4 = por %p1720_p1, %p1719_p13 }
 0x2af   : > { %p1717_p10 = pneg %p1716_p11 }
 0x2b1   : > { %p1722_p8 = pnand %p1721_p4, %p1717_p10 }
 0x2b3   : > { %1725 = shalt.err (!%p1722_p8)
}
 0x2b4   : > { %1432 = dma.vmem_to_hbm [thread:$0]  (%p1944_p12), %s2132_s28, 512, %s2139_s29, %s2141_s0, %s1814_s9, %s1814_s9, %s1815_s6  }
 0x2b5 PF: > { %s2286_s27 = sld [smem:[#allocation15_spill]]  ;;  %p1457_p0 = scmp.ge.s32.totalorder %s1804_s8, 2 }
 0x2b6   : > { %s2287_s1 = sld [smem:[#allocation17_spill]] }
 0x2bb   : > { %s1064_s7 = sand.u32 1, %s2286_s27  }
 0x2bc   : > { %p2288_p3 = scmp.ne.s32.totalorder %s2287_s1, 0  ;;  %s1065_s18 = scalar_lea.sflag [#allocation4], %s1064_s7 }
 0x2be   : > { %p1445_p5 = pnand %p1457_p0, %p2288_p3 }
 0x2c0   : > { %p1446_p2 = pneg %p1445_p5 }
 0x2c2   : > { %1767 = dma.done.wait (%p1446_p2), %s1065_s18, 512  }
 0x2c3   : > { %1769 = vsyncadd (%p1446_p2), %s1065_s18, 4294966784  ;;  %s2289_s17 = sadd.s32 4294967294, %s1804_s8  }
 0x2c4   : > { %s1073_s19 = sand.u32 1, %s2289_s17  }
 0x2c5   : > { %s1074_s10 = scalar_lea.sflag [#allocation9], %s1073_s19 }
 0x2c6   : > { %1771 = dma.done.wait (%p1446_p2), %s1074_s10, 1024  }
 0x2c7   : > { %1773 = vsyncadd (%p1446_p2), %s1074_s10, 4294966272  ;;  %s28_s8 = sadd.s32 1, %s1804_s8   ;;  %s2290_s0 = smov %s1961_s24 }
 0x2c8   : > { %p25_p12 = scmp.ge.s32.totalorder %s28_s8, 6   ;;  %s2291_s27 = sld [smem:[#allocation16_spill]] }
 0x2c9   : > { %s2292_s29 = sld [smem:[#allocation18_spill]]  ;;  %s2293_s24 = smov %s1780_s25 }
 0x2ca   : > { %s2294_s25 = smov %s1784_s26  ;;  %s2295_s26 = smov %s2290_s0 }
 0x2cb   : > { %s2296_s28 = smov %s1800_s30  ;;  %s2297_s30 = smov %s2303_s22 }
 0x2cc   :  { %27 = sbr.rel (!%p25_p12) target bundleno = 16 (0x10), region = 121 }
 0x2d1   :  { %1088 = vsyncpa [#allocation3], 1 }
 0x2d2   :  { %1090 = vsyncpa [#allocation3 + $0x1], 1 }
 0x2d3   :  { %1091 = vsyncpa [#allocation6], 1 }
 0x2d4   :  { %1092 = vsyncpa [#allocation4], 1 }
 0x2d5   :  { %1094 = vsyncpa [#allocation4 + $0x1], 1 }
 0x2d6   :  { %1095 = vsyncpa [#allocation9], 1 }
 0x2d7   :  { %1097 = vsyncpa [#allocation9 + $0x1], 1 }

</bundles_post_ra>
